<compile_context>
chip_gen: v7x
topology: tpu7x:2x2x1
jax: 0.10.0
libtpu: 0.0.40
codegen_flags: <defaults>
</compile_context>

<pallas_src>
import math

import jax
import jax.numpy as jnp
from jax.experimental import pallas as pl
from jax.experimental.pallas import tpu as pltpu


def _round_up(x: int, m: int) -> int:
    return (x + m - 1) // m * m


# ----------------------------------------------------------------------------
# Kernel: fused  y = x @ W_t + b   (one row-tile per grid step)
# ----------------------------------------------------------------------------
def _linear_kernel(x_ref, w_ref, b_ref, o_ref):
    acc = jnp.dot(x_ref[...], w_ref[...], preferred_element_type=jnp.float32)
    o_ref[...] = (acc + b_ref[...]).astype(o_ref.dtype)


def log_classifier(cls, weight, bias, *, block_rows: int = 256):
    """LogClassifier.forward.

    cls:    [..., H_in]   float32 activations (any leading dims)
    weight: [H_out, H_in] float32 (PyTorch nn.Linear layout)
    bias:   [H_out]       float32
    returns [..., H_out]  float32
    """
    orig_shape = cls.shape
    H_in = orig_shape[-1]
    H_out = weight.shape[0]
    M = math.prod(orig_shape[:-1]) if len(orig_shape) > 1 else 1

    x2 = cls.reshape(M, H_in).astype(jnp.float32)

    # Pre-transpose once to [H_in, H_out] so the kernel does x @ w_t directly.
    w_t = jnp.transpose(weight).astype(jnp.float32)
    b = bias.astype(jnp.float32)

    # Pad the output (lane) dim to a multiple of 128 -> unmasked lane-dense stores.
    Vp = _round_up(H_out, 128)
    if Vp != H_out:
        w_t = jnp.pad(w_t, ((0, 0), (0, Vp - H_out)))
        b = jnp.pad(b, (0, Vp - H_out))
    b2 = b.reshape(1, Vp)

    # Row tile: large (default 256) at realistic sizes, shrunk (but sublane
    # aligned) for tiny inputs.  Rows are zero-padded to a tile multiple.
    TM = min(block_rows, _round_up(max(M, 1), 8))
    Mp = _round_up(max(M, 1), TM)
    if Mp != M:
        x2 = jnp.pad(x2, ((0, Mp - M), (0, 0)))

    out = pl.pallas_call(
        _linear_kernel,
        out_shape=jax.ShapeDtypeStruct((Mp, Vp), jnp.float32),
        grid_spec=pltpu.PrefetchScalarGridSpec(
            num_scalar_prefetch=0,
            grid=(Mp // TM,),
            in_specs=[
                pl.BlockSpec((TM, H_in), lambda i: (i, 0)),   # activation row tile
                pl.BlockSpec((H_in, Vp), lambda i: (0, 0)),   # resident weight
                pl.BlockSpec((1, Vp), lambda i: (0, 0)),      # resident bias
            ],
            out_specs=pl.BlockSpec((TM, Vp), lambda i: (i, 0)),
        ),
        compiler_params=pltpu.CompilerParams(
            dimension_semantics=("parallel",),        # row tiles independent -> megacore
            vmem_limit_bytes=64 * 1024 * 1024,        # headroom for resident weight
        ),
    )(x2, w_t, b2)

    out = out[:M, :H_out]
    return out.reshape(*orig_shape[:-1], H_out)


# ----------------------------------------------------------------------------
# Demo / correctness check
# ----------------------------------------------------------------------------
if __name__ == "__main__":
    key = jax.random.PRNGKey(0)
    k_w, k_b, k_x1, k_x2 = jax.random.split(key, 4)

    HIDDEN = 32
    scale = 0.02
    weight = scale * jax.random.normal(k_w, (HIDDEN, HIDDEN), jnp.float32)
    bias = scale * jax.random.normal(k_b, (HIDDEN,), jnp.float32)

    # Case 1: typical use — batch of CLS embeddings, [B, hidden].
    cls_small = jax.random.normal(k_x1, (2, HIDDEN), jnp.float32)
    out_small = log_classifier(cls_small, weight, bias)
    jax.block_until_ready(out_small)
    ref_small = cls_small @ weight.T + bias
    assert out_small.shape == (2, HIDDEN)
    assert jnp.allclose(out_small, ref_small, atol=1e-5), "small-case mismatch"

    # Case 2: larger, non-aligned row count -> exercises row padding and a
    # multi-step parallel grid (block_rows=64 keeps the test small).
    cls_big = jax.random.normal(k_x2, (520, HIDDEN), jnp.float32)
    out_big = log_classifier(cls_big, weight, bias, block_rows=64)
    jax.block_until_ready(out_big)
    ref_big = cls_big @ weight.T + bias
    assert out_big.shape == (520, HIDDEN)
    assert jnp.allclose(out_big, ref_big, atol=1e-5), "big-case mismatch"

    print("KERNEL_OK")
</pallas_src>

<mosaic_0001>
module attributes {stable_mosaic.version = 11 : i64} {
  func.func @_linear_kernel(%arg0: i32, %arg1: memref<8x32xf32, #tpu.memory_space<vmem>>, %arg2: memref<32x128xf32, #tpu.memory_space<vmem>>, %arg3: memref<1x128xf32, #tpu.memory_space<vmem>>, %arg4: memref<8x128xf32, #tpu.memory_space<vmem>>) attributes {dimension_semantics = [#tpu.dimension_semantics<parallel>], iteration_bounds = array<i64: 1>, scalar_prefetch = 0 : i64, scratch_operands = 0 : i64, tpu.core_type = #tpu.core_type<tc>, window_params = [{transform_indices = @transform_0, window_bounds = array<i64: 8, 32>}, {pipeline_mode = #tpu.pipeline_mode<synchronous>, transform_indices = @transform_1, window_bounds = array<i64: 32, 128>}, {pipeline_mode = #tpu.pipeline_mode<synchronous>, transform_indices = @transform_2, window_bounds = array<i64: 1, 128>}, {transform_indices = @transform_3, window_bounds = array<i64: 8, 128>}]} {
    %c0 = arith.constant 0 : index
    %c0_0 = arith.constant 0 : index
    %0 = vector.load %arg1[%c0, %c0_0] : memref<8x32xf32, #tpu.memory_space<vmem>>, vector<8x32xf32>
    %c0_1 = arith.constant 0 : index
    %c0_2 = arith.constant 0 : index
    %1 = vector.load %arg2[%c0_1, %c0_2] : memref<32x128xf32, #tpu.memory_space<vmem>>, vector<32x128xf32>
    %cst = arith.constant dense<0.000000e+00> : vector<8x128xf32>
    %2 = tpu.matmul %0, %1, %cst {dimension_numbers = #tpu.dot_dimension_numbers<[1], [0], [0], [1], [0, 0, 1, 1], [], []>} : vector<8x32xf32>, vector<32x128xf32>, vector<8x128xf32> -> vector<8x128xf32>
    %c0_3 = arith.constant 0 : index
    %c0_4 = arith.constant 0 : index
    %3 = vector.load %arg3[%c0_3, %c0_4] : memref<1x128xf32, #tpu.memory_space<vmem>>, vector<1x128xf32>
    %4 = vector.broadcast %3 : vector<1x128xf32> to vector<8x128xf32>
    %5 = arith.addf %2, %4 : vector<8x128xf32>
    %c0_5 = arith.constant 0 : index
    %c0_6 = arith.constant 0 : index
    %6 = vector.load %arg4[%c0_5, %c0_6] : memref<8x128xf32, #tpu.memory_space<vmem>>, vector<8x128xf32>
    tpu.vector_store %arg4[%c0_5, %c0_6], %5 {strides = array<i32>} : memref<8x128xf32, #tpu.memory_space<vmem>>, vector<8x128xf32>,
    return
  }
  func.func @transform_0(%arg0: i32) -> (i32, i32) {
    %c0_i32 = arith.constant 0 : i32
    %c0_i32_0 = arith.constant 0 : i32
    return %arg0, %c0_i32 : i32, i32
  }
  func.func @transform_1(%arg0: i32) -> (i32, i32) {
    %c0_i32 = arith.constant 0 : i32
    %c0_i32_0 = arith.constant 0 : i32
    %c0_i32_1 = arith.constant 0 : i32
    return %c0_i32, %c0_i32_0 : i32, i32
  }
  func.func @transform_2(%arg0: i32) -> (i32, i32) {
    %c0_i32 = arith.constant 0 : i32
    %c0_i32_0 = arith.constant 0 : i32
    %c0_i32_1 = arith.constant 0 : i32
    return %c0_i32, %c0_i32_0 : i32, i32
  }
  func.func @transform_3(%arg0: i32) -> (i32, i32) {
    %c0_i32 = arith.constant 0 : i32
    %c0_i32_0 = arith.constant 0 : i32
    return %arg0, %c0_i32 : i32, i32
  }
}

</mosaic_0001>

<bundles_post_ra>
// kernel: tpu_custom_call.1
= control target key start
LH: loop header
LB: loop body
LE: loop exit
PB: predicated region body
PF: predicated region fallthrough
CT: control target
= control target key end

     0   :  { %8 = vsyncpa [#allocation3], 0  ;;  %s359_s0 = inlined_call_operand.hbm [shape: f32[8,32], index: 0, kind: input, shape index: {}]   ;;  %s360_s1 = inlined_call_operand.hbm [shape: f32[32,128], index: 1, kind: input, shape index: {}]   ;;  %s361_s2 = inlined_call_operand.hbm [shape: f32[1,128], index: 2, kind: input, shape index: {}]   ;;  %s362_s3 = inlined_call_operand.hbm [shape: f32[8,128], index: 3, kind: output, shape index: {}]  }
   0x1   :  { %9 = vsyncpa [#allocation6], 0 }
   0x2   :  { %10 = vsyncpa [#allocation4], 0  ;;  %s282_s12 = smov [#allocation5]   ;;  %s188_s16 = scalar_lea.hbm %s360_s1, 512 }
   0x3   :  { %s26_s13 = sshll.u32 %s282_s12, 4  ;;  %p189_p0 = scmp.ne.s32.totalorder %s360_s1, %s188_s16  ;;  %s27_s13 = int_to_ptr.vmem [resolvable:$true] %s26_s13 }
   0x4   :  { %p192_p1 = scmp.lt.u32.totalorder %s188_s16, %s360_s1 }
   0x6   :  { %p194_p2 = pnand %p192_p1, %p189_p0 }
   0x8   :  { %197 = shalt.err (!%p194_p2)
}
   0x9   :  { %s198_s21 = scalar_lea.vmem %s27_s13, 512  ;;  %p203_p4 = scmp.lt.s32.totalorder %s27_s13, %s27_s13 }
   0xa   :  { %p199_p3 = scmp.ne.s32.totalorder %s27_s13, %s198_s21  ;;  %p204_p5 = scmp.lt.s32.totalorder %s198_s21, %s198_s21 }
   0xc   :  { %p205_p6 = por %p204_p5, %p203_p4 }
   0xe   :  { %p206_p7 = pnand %p205_p6, %p199_p3 }
  0x10   :  { %209 = shalt.err (!%p206_p7)
}
  0x11   :  { %s283_s22 = smov 128   ;;  %s284_s23 = smov 8  }
  0x12   :  { %32 = dma.hbm_to_vmem [thread:$0]  %s360_s1, 512, %s27_s13, [#allocation6], %s283_s22, %s283_s22, %s284_s23  }
  0x13   :  { %s285_s26 = smov [#allocation2]   ;;  %s286_s28 = smov [#allocation7]  }
  0x14   :  { %s17_s27 = sshll.u32 %s285_s26, 4  ;;  %s39_s29 = sshll.u32 %s286_s28, 4  ;;  %s18_s27 = int_to_ptr.vmem [resolvable:$true] %s17_s27  ;;  %s40_s29 = int_to_ptr.vmem [resolvable:$true] %s39_s29 }
  0x15   :  { %s210_s5 = scalar_lea.hbm %s359_s0, 128 }
  0x16   :  { %p211_p8 = scmp.ne.s32.totalorder %s359_s0, %s210_s5  ;;  %p214_p9 = scmp.lt.u32.totalorder %s210_s5, %s359_s0 }
  0x18   :  { %p216_p10 = pnand %p214_p9, %p211_p8 }
  0x1a   :  { %219 = shalt.err (!%p216_p10)
}
  0x1b   :  { %s220_s1 = scalar_lea.vmem %s18_s27, 128  ;;  %p225_p12 = scmp.lt.s32.totalorder %s18_s27, %s18_s27 }
  0x1c   :  { %p221_p11 = scmp.ne.s32.totalorder %s18_s27, %s220_s1  ;;  %p226_p13 = scmp.lt.s32.totalorder %s220_s1, %s220_s1 }
  0x1e   :  { %p227_p0 = por %p226_p13, %p225_p12 }
  0x20   :  { %p228_p1 = pnand %p227_p0, %p221_p11 }
  0x22   :  { %231 = shalt.err (!%p228_p1)
}
  0x23   :  { %20 = dma.hbm_to_vmem [thread:$0]  %s359_s0, 128, %s18_s27, [#allocation3]  }
  0x24   :  { %s232_s14 = scalar_lea.hbm %s361_s2, 16 }
  0x25   :  { %p233_p2 = scmp.ne.s32.totalorder %s361_s2, %s232_s14  ;;  %p236_p3 = scmp.lt.u32.totalorder %s232_s14, %s361_s2 }
  0x27   :  { %p238_p4 = pnand %p236_p3, %p233_p2 }
  0x29   :  { %241 = shalt.err (!%p238_p4)
}
  0x2a   :  { %s242_s19 = scalar_lea.vmem %s40_s29, 16  ;;  %s246_s20 = scalar_lea.vmem %s40_s29, 32 }
  0x2b   :  { %p243_p5 = scmp.ne.s32.totalorder %s40_s29, %s242_s19  ;;  %p247_p6 = scmp.lt.s32.totalorder %s40_s29, %s40_s29 }
  0x2c   :  { %p248_p7 = scmp.lt.s32.totalorder %s246_s20, %s242_s19 }
  0x2e   :  { %p249_p8 = por %p248_p7, %p247_p6 }
  0x30   :  { %p250_p9 = pnand %p249_p8, %p243_p5 }
  0x32   :  { %253 = shalt.err (!%p250_p9)
}
  0x33   :  { %42 = dma.hbm_to_vmem [thread:$0]  %s361_s2, 16, %s40_s29, [#allocation6]  }
  0x34   :  { %276 = dma.done.wait [#allocation3], 128  }
  0x35   :  { %277 = vsyncadd [#allocation3], 4294967168 }
  0x36   :  { %278 = dma.done.wait [#allocation6], 528  }
  0x37   :  { %279 = vsyncadd [#allocation6], 4294966768  ;;  %v287_v0 = vmov 0.0|0.0   ;;  %vm288_vm0 = vmmov 0   ;;  %v289_v1 = vmov 0.0   ;;  %v53_v2 = vld [vmem:[#allocation5] sm:$0xff] }
  0x38   :  { %173 = vmatprep.subr.bf16.mxu0 %v287_v0  ;;  %170 = vmatprep.mubr.msk.f32.mxu0 %vm288_vm0, %v289_v1  ;;  %v54_v3 = vld [vmem:[#allocation5 + $0x8] sm:$0xff]  ;;  %v55_v4 = vld [vmem:[#allocation5 + $0x10] sm:$0xff]  ;;  %v56_v6 = vld [vmem:[#allocation5 + $0x18] sm:$0xff]  ;;  %vm64_vm1 = vcmask 261120   ;;  %s290_s2 = smov [#allocation8]  }
  0x39   :  { %v174_v5 = vpack.c.bf16 %v54_v3, %v53_v2  ;;  %v177_v7 = vpack.c.bf16 %v56_v6, %v55_v4  ;;  %v52_v8 = vld [vmem:[#allocation2] sm:$0xff]  ;;  %v155_v9 = vld [vmem:[#allocation7] ss:$0 sm:$0xff]  ;;  %s145_s22 = sshll.u32 %s290_s2, 4  ;;  %s146_s22 = int_to_ptr.vmem [resolvable:$true] %s145_s22 }
  0x3a   :  { %s254_s23 = scalar_lea.vmem %s146_s22, 128  ;;  %p259_p11 = scmp.lt.s32.totalorder %s146_s22, %s146_s22 }
  0x3b   :  { %175 = vmatpush3.bf16.msra.mxu0 %v174_v5  ;;  %p255_p10 = scmp.ne.s32.totalorder %s146_s22, %s254_s23  ;;  %p260_p12 = scmp.lt.s32.totalorder %s254_s23, %s254_s23 }
  0x3c   :  { %176 = vmatprep.subr.bf16.mxu0 %v287_v0 }
  0x3d   :  { %p261_p13 = por %p260_p12, %p259_p11 }
  0x3f   :  { %178 = vmatpush3.bf16.msra.mxu0 %v177_v7  ;;  %p262_p0 = pnand %p261_p13, %p255_p10 }
  0x42   :  { %171 = vmatmul.mubr.msk.f32.vlgmr.msra.gmra.mrb[0].mxu0 %vm64_vm1, %v52_v8 }
 0x115   :  { %v134_v10 = vpop.f32.mrb[0].mxu0 }
 0x116   :  { %v135_v11 = vadd.f32 %v155_v9, %v134_v10  ;;  %v172_v12 = vpop.f32.mrb[1].mxu0 }
 0x118   :  { %138 = vst [vmem:[#allocation8] sm:$0xff] %v135_v11 }
 0x119   :  { %265 = shalt.err (!%p262_p0)
}
 0x11a   :  { %s266_s26 = scalar_lea.hbm %s362_s3, 128 }
 0x11b   :  { %p267_p1 = scmp.ne.s32.totalorder %s362_s3, %s266_s26  ;;  %p270_p2 = scmp.lt.u32.totalorder %s266_s26, %s362_s3 }
 0x11d   :  { %p272_p3 = pnand %p270_p2, %p267_p1 }
 0x11f   :  { %275 = shalt.err (!%p272_p3)
}
 0x120   :  { %148 = dma.vmem_to_hbm [thread:$0]  %s146_s22, 128, %s362_s3, [#allocation4]  }
 0x121   :  { %280 = dma.done.wait [#allocation4], 128  }
 0x122   :  { %281 = vsyncadd [#allocation4], 4294967168 }
 0x123   :  { %152 = vsyncpa [#allocation3], 1 }
 0x124   :  { %153 = vsyncpa [#allocation6], 1 }
 0x125   :  { %154 = vsyncpa [#allocation4], 1 }

</bundles_post_ra>
